<compile_context>
chip_gen: v7x
topology: tpu7x:2x2x1
jax: 0.10.0
libtpu: 0.0.40
codegen_flags: <defaults>
</compile_context>

<pallas_src>
import math

import jax
import jax.numpy as jnp
from jax.experimental import pallas as pl
from jax.experimental.pallas import tpu as pltpu

# Small shapes consistent with the module's forward.
B = 2                        # batch
INPUT_DIMS = [64, 32, 16]    # encoder ProjectionHead dims
LATENT_DIM = 8               # fc_mu / fc_log_var output dim
OUTPUT_DIMS = [16, 32, 64]   # decoder ProjectionHead dims (in == input_dims[-1])

NEG_SLOPE = 0.01             # PyTorch nn.LeakyReLU default

SUB = 8      # sublane pad for the batch axis
LANE = 128   # lane pad for every feature axis


def _leaky_relu(x):
    # slope < 1  =>  max(x, slope*x) == leaky_relu(x)   (pure VPU, no branches)
    return jnp.maximum(x, NEG_SLOPE * x)


def _fingerprint_kernel(x_ref,
                        we1_ref, be1_ref, we2_ref, be2_ref,
                        wstat_ref, bstat_ref,
                        wd1_ref, bd1_ref, wd2_ref, bd2_ref,
                        stats_ref, out_ref):
    """Fused FingerprintEncoder forward.

    All operands are zero-padded in the wrapper to (8, 128)-aligned f32 tiles, so
    every jnp.dot is a clean MXU tile and both output stores are lane-dense.

    x_ref:     (SUB, LANE)
    we1/we2:   (LANE, LANE)   encoder Linears        be1/be2: (1, LANE)
    wstat:     (LANE, 2*LANE) [fc_mu | fc_log_var]   bstat:   (1, 2*LANE)
    wd1/wd2:   (LANE, LANE)   decoder Linears        bd1/bd2: (1, LANE)
    stats_ref: (SUB, 2*LANE)  mu in lanes [0,LANE), log_var in [LANE,2*LANE)
    out_ref:   (SUB, LANE)    reconstruction
    """
    x = x_ref[...]

    # encoder ProjectionHead
    h = _leaky_relu(
        jnp.dot(x, we1_ref[...], preferred_element_type=jnp.float32) + be1_ref[...])
    latent = jnp.dot(h, we2_ref[...], preferred_element_type=jnp.float32) + be2_ref[...]

    # fc_mu / fc_log_var fused into one wide matmul (lane-dense output)
    stats_ref[...] = (
        jnp.dot(latent, wstat_ref[...], preferred_element_type=jnp.float32)
        + bstat_ref[...])

    # decoder ProjectionHead
    h2 = _leaky_relu(
        jnp.dot(latent, wd1_ref[...], preferred_element_type=jnp.float32) + bd1_ref[...])
    out_ref[...] = (
        jnp.dot(h2, wd2_ref[...], preferred_element_type=jnp.float32) + bd2_ref[...])


def _pad2(a, rows, cols):
    r, c = a.shape
    return jnp.zeros((rows, cols), jnp.float32).at[:r, :c].set(a.astype(jnp.float32))


@jax.jit
def fingerprint_encoder(x, params):
    """Returns (mu, log_var, output), matching FingerprintEncoder.forward."""
    (we1, be1, we2, be2, wmu, bmu, wlv, blv, wd1, bd1, wd2, bd2) = params

    # ---- wrapper-side layout plumbing: zero-pad to (8,128)-aligned tiles ----
    xp = _pad2(x, SUB, LANE)
    we1p, be1p = _pad2(we1, LANE, LANE), _pad2(be1[None, :], 1, LANE)
    we2p, be2p = _pad2(we2, LANE, LANE), _pad2(be2[None, :], 1, LANE)
    wd1p, bd1p = _pad2(wd1, LANE, LANE), _pad2(bd1[None, :], 1, LANE)
    wd2p, bd2p = _pad2(wd2, LANE, LANE), _pad2(bd2[None, :], 1, LANE)

    # fuse fc_mu / fc_log_var into one (LANE, 2*LANE) matmul
    wstat = jnp.zeros((LANE, 2 * LANE), jnp.float32)
    wstat = wstat.at[: wmu.shape[0], : wmu.shape[1]].set(wmu)
    wstat = wstat.at[: wlv.shape[0], LANE:LANE + wlv.shape[1]].set(wlv)
    bstat = jnp.zeros((1, 2 * LANE), jnp.float32)
    bstat = bstat.at[0, : bmu.shape[0]].set(bmu)
    bstat = bstat.at[0, LANE:LANE + blv.shape[0]].set(blv)

    vmem = pl.BlockSpec(memory_space=pltpu.MemorySpace.VMEM)

    # advisory cost hint for XLA scheduling around the custom call
    flops = 2 * SUB * LANE * (LANE + LANE + 2 * LANE + LANE + LANE)
    bytes_in = 4 * (SUB * LANE + 4 * LANE * LANE + LANE * 2 * LANE
                    + 4 * LANE + 2 * LANE)
    bytes_out = 4 * (SUB * 2 * LANE + SUB * LANE)
    cost = pl.CostEstimate(flops=flops, transcendentals=0,
                           bytes_accessed=bytes_in + bytes_out)

    stats_p, out_p = pl.pallas_call(
        _fingerprint_kernel,
        out_shape=(jax.ShapeDtypeStruct((SUB, 2 * LANE), jnp.float32),
                   jax.ShapeDtypeStruct((SUB, LANE), jnp.float32)),
        in_specs=[vmem] * 11,
        out_specs=(vmem, vmem),
        cost_estimate=cost,
    )(xp, we1p, be1p, we2p, be2p, wstat, bstat, wd1p, bd1p, wd2p, bd2p)

    mu = stats_p[:B, :LATENT_DIM]
    log_var = stats_p[:B, LANE:LANE + LATENT_DIM]
    output = out_p[:B, :OUTPUT_DIMS[-1]]
    return mu, log_var, output


# ----------------------------- reference & init -----------------------------

def xavier_uniform(key, shape):
    fan_in, fan_out = shape
    limit = math.sqrt(6.0 / (fan_in + fan_out))
    return jax.random.uniform(key, shape, jnp.float32, -limit, limit)


def reference(x, params):
    (we1, be1, we2, be2, wmu, bmu, wlv, blv, wd1, bd1, wd2, bd2) = params

    def leaky(v):
        return jnp.where(v >= 0, v, NEG_SLOPE * v)

    h = leaky(x @ we1 + be1)
    latent = h @ we2 + be2
    mu = latent @ wmu + bmu
    log_var = latent @ wlv + blv
    h2 = leaky(latent @ wd1 + bd1)
    out = h2 @ wd2 + bd2
    return mu, log_var, out


if __name__ == "__main__":
    key = jax.random.PRNGKey(0)
    ks = jax.random.split(key, 14)

    we1 = xavier_uniform(ks[0], (INPUT_DIMS[0], INPUT_DIMS[1]))
    be1 = 0.02 * jax.random.normal(ks[1], (INPUT_DIMS[1],), jnp.float32)
    we2 = xavier_uniform(ks[2], (INPUT_DIMS[1], INPUT_DIMS[2]))
    be2 = 0.02 * jax.random.normal(ks[3], (INPUT_DIMS[2],), jnp.float32)
    wmu = xavier_uniform(ks[4], (INPUT_DIMS[2], LATENT_DIM))
    bmu = 0.02 * jax.random.normal(ks[5], (LATENT_DIM,), jnp.float32)
    wlv = xavier_uniform(ks[6], (INPUT_DIMS[2], LATENT_DIM))
    blv = 0.02 * jax.random.normal(ks[7], (LATENT_DIM,), jnp.float32)
    wd1 = xavier_uniform(ks[8], (OUTPUT_DIMS[0], OUTPUT_DIMS[1]))
    bd1 = 0.02 * jax.random.normal(ks[9], (OUTPUT_DIMS[1],), jnp.float32)
    wd2 = xavier_uniform(ks[10], (OUTPUT_DIMS[1], OUTPUT_DIMS[2]))
    bd2 = 0.02 * jax.random.normal(ks[11], (OUTPUT_DIMS[2],), jnp.float32)
    params = (we1, be1, we2, be2, wmu, bmu, wlv, blv, wd1, bd1, wd2, bd2)

    x = jax.random.normal(ks[12], (B, INPUT_DIMS[0]), jnp.float32)

    mu, log_var, output = fingerprint_encoder(x, params)
    (mu, log_var, output) = jax.block_until_ready((mu, log_var, output))

    rmu, rlv, rout = reference(x, params)
    assert mu.shape == (B, LATENT_DIM)
    assert log_var.shape == (B, LATENT_DIM)
    assert output.shape == (B, OUTPUT_DIMS[-1])
    assert jnp.allclose(mu, rmu, atol=1e-5, rtol=1e-5), "mu mismatch"
    assert jnp.allclose(log_var, rlv, atol=1e-5, rtol=1e-5), "log_var mismatch"
    assert jnp.allclose(output, rout, atol=1e-5, rtol=1e-5), "output mismatch"
    print("KERNEL_OK")
</pallas_src>

<mosaic_0001>
module attributes {stable_mosaic.version = 11 : i64} {
  func.func @_fingerprint_kernel(%arg0: memref<8x128xf32, #tpu.memory_space<vmem>>, %arg1: memref<128x128xf32, #tpu.memory_space<vmem>>, %arg2: memref<1x128xf32, #tpu.memory_space<vmem>>, %arg3: memref<128x128xf32, #tpu.memory_space<vmem>>, %arg4: memref<1x128xf32, #tpu.memory_space<vmem>>, %arg5: memref<128x256xf32, #tpu.memory_space<vmem>>, %arg6: memref<1x256xf32, #tpu.memory_space<vmem>>, %arg7: memref<128x128xf32, #tpu.memory_space<vmem>>, %arg8: memref<1x128xf32, #tpu.memory_space<vmem>>, %arg9: memref<128x128xf32, #tpu.memory_space<vmem>>, %arg10: memref<1x128xf32, #tpu.memory_space<vmem>>, %arg11: memref<8x256xf32, #tpu.memory_space<vmem>>, %arg12: memref<8x128xf32, #tpu.memory_space<vmem>>) attributes {dimension_semantics = [], scalar_prefetch = 0 : i64, scratch_operands = 0 : i64, tpu.core_type = #tpu.core_type<tc>} {
    %c0 = arith.constant 0 : index
    %c0_0 = arith.constant 0 : index
    %0 = vector.load %arg0[%c0, %c0_0] : memref<8x128xf32, #tpu.memory_space<vmem>>, vector<8x128xf32>
    %c0_1 = arith.constant 0 : index
    %c0_2 = arith.constant 0 : index
    %1 = vector.load %arg1[%c0_1, %c0_2] : memref<128x128xf32, #tpu.memory_space<vmem>>, vector<128x128xf32>
    %cst = arith.constant dense<0.000000e+00> : vector<8x128xf32>
    %2 = tpu.matmul %0, %1, %cst {dimension_numbers = #tpu.dot_dimension_numbers<[1], [0], [0], [1], [0, 0, 1, 1], [], []>} : vector<8x128xf32>, vector<128x128xf32>, vector<8x128xf32> -> vector<8x128xf32>
    %c0_3 = arith.constant 0 : index
    %c0_4 = arith.constant 0 : index
    %3 = vector.load %arg2[%c0_3, %c0_4] : memref<1x128xf32, #tpu.memory_space<vmem>>, vector<1x128xf32>
    %4 = vector.broadcast %3 : vector<1x128xf32> to vector<8x128xf32>
    %5 = arith.addf %2, %4 : vector<8x128xf32>
    %cst_5 = arith.constant 0.00999999977 : f32
    %6 = vector.broadcast %cst_5 : f32 to vector<8x128xf32>
    %7 = arith.mulf %6, %5 : vector<8x128xf32>
    %8 = arith.maximumf %5, %7 : vector<8x128xf32>
    %c0_6 = arith.constant 0 : index
    %c0_7 = arith.constant 0 : index
    %9 = vector.load %arg3[%c0_6, %c0_7] : memref<128x128xf32, #tpu.memory_space<vmem>>, vector<128x128xf32>
    %cst_8 = arith.constant dense<0.000000e+00> : vector<8x128xf32>
    %10 = tpu.matmul %8, %9, %cst_8 {dimension_numbers = #tpu.dot_dimension_numbers<[1], [0], [0], [1], [0, 0, 1, 1], [], []>} : vector<8x128xf32>, vector<128x128xf32>, vector<8x128xf32> -> vector<8x128xf32>
    %c0_9 = arith.constant 0 : index
    %c0_10 = arith.constant 0 : index
    %11 = vector.load %arg4[%c0_9, %c0_10] : memref<1x128xf32, #tpu.memory_space<vmem>>, vector<1x128xf32>
    %12 = vector.broadcast %11 : vector<1x128xf32> to vector<8x128xf32>
    %13 = arith.addf %10, %12 : vector<8x128xf32>
    %c0_11 = arith.constant 0 : index
    %c0_12 = arith.constant 0 : index
    %14 = vector.load %arg5[%c0_11, %c0_12] : memref<128x256xf32, #tpu.memory_space<vmem>>, vector<128x256xf32>
    %cst_13 = arith.constant dense<0.000000e+00> : vector<8x256xf32>
    %15 = tpu.matmul %13, %14, %cst_13 {dimension_numbers = #tpu.dot_dimension_numbers<[1], [0], [0], [1], [0, 0, 1, 1], [], []>} : vector<8x128xf32>, vector<128x256xf32>, vector<8x256xf32> -> vector<8x256xf32>
    %c0_14 = arith.constant 0 : index
    %c0_15 = arith.constant 0 : index
    %16 = vector.load %arg6[%c0_14, %c0_15] : memref<1x256xf32, #tpu.memory_space<vmem>>, vector<1x256xf32>
    %17 = vector.broadcast %16 : vector<1x256xf32> to vector<8x256xf32>
    %18 = arith.addf %15, %17 : vector<8x256xf32>
    %c0_16 = arith.constant 0 : index
    %c0_17 = arith.constant 0 : index
    %19 = vector.load %arg11[%c0_16, %c0_17] : memref<8x256xf32, #tpu.memory_space<vmem>>, vector<8x256xf32>
    tpu.vector_store %arg11[%c0_16, %c0_17], %18 {strides = array<i32>} : memref<8x256xf32, #tpu.memory_space<vmem>>, vector<8x256xf32>,
    %c0_18 = arith.constant 0 : index
    %c0_19 = arith.constant 0 : index
    %20 = vector.load %arg7[%c0_18, %c0_19] : memref<128x128xf32, #tpu.memory_space<vmem>>, vector<128x128xf32>
    %cst_20 = arith.constant dense<0.000000e+00> : vector<8x128xf32>
    %21 = tpu.matmul %13, %20, %cst_20 {dimension_numbers = #tpu.dot_dimension_numbers<[1], [0], [0], [1], [0, 0, 1, 1], [], []>} : vector<8x128xf32>, vector<128x128xf32>, vector<8x128xf32> -> vector<8x128xf32>
    %c0_21 = arith.constant 0 : index
    %c0_22 = arith.constant 0 : index
    %22 = vector.load %arg8[%c0_21, %c0_22] : memref<1x128xf32, #tpu.memory_space<vmem>>, vector<1x128xf32>
    %23 = vector.broadcast %22 : vector<1x128xf32> to vector<8x128xf32>
    %24 = arith.addf %21, %23 : vector<8x128xf32>
    %cst_23 = arith.constant 0.00999999977 : f32
    %25 = vector.broadcast %cst_23 : f32 to vector<8x128xf32>
    %26 = arith.mulf %25, %24 : vector<8x128xf32>
    %27 = arith.maximumf %24, %26 : vector<8x128xf32>
    %c0_24 = arith.constant 0 : index
    %c0_25 = arith.constant 0 : index
    %28 = vector.load %arg9[%c0_24, %c0_25] : memref<128x128xf32, #tpu.memory_space<vmem>>, vector<128x128xf32>
    %cst_26 = arith.constant dense<0.000000e+00> : vector<8x128xf32>
    %29 = tpu.matmul %27, %28, %cst_26 {dimension_numbers = #tpu.dot_dimension_numbers<[1], [0], [0], [1], [0, 0, 1, 1], [], []>} : vector<8x128xf32>, vector<128x128xf32>, vector<8x128xf32> -> vector<8x128xf32>
    %c0_27 = arith.constant 0 : index
    %c0_28 = arith.constant 0 : index
    %30 = vector.load %arg10[%c0_27, %c0_28] : memref<1x128xf32, #tpu.memory_space<vmem>>, vector<1x128xf32>
    %31 = vector.broadcast %30 : vector<1x128xf32> to vector<8x128xf32>
    %32 = arith.addf %29, %31 : vector<8x128xf32>
    %c0_29 = arith.constant 0 : index
    %c0_30 = arith.constant 0 : index
    %33 = vector.load %arg12[%c0_29, %c0_30] : memref<8x128xf32, #tpu.memory_space<vmem>>, vector<8x128xf32>
    tpu.vector_store %arg12[%c0_29, %c0_30], %32 {strides = array<i32>} : memref<8x128xf32, #tpu.memory_space<vmem>>, vector<8x128xf32>,
    return
  }
}

</mosaic_0001>

<bundles_post_ra>
// kernel: fingerprint_encoder.1
= control target key start
LH: loop header
LB: loop body
LE: loop exit
PB: predicated region body
PF: predicated region fallthrough
CT: control target
= control target key end

     0   :  { %v886_v0 = vmov 0.0|0.0   ;;  %vm887_vm0 = vmmov 0   ;;  %v888_v4 = vmov 0.0   ;;  %s1310_s1 = inlined_call_operand.vmem [shape: f32[128,128], index: 1, kind: input, shape index: {}]   ;;  %s1311_s3 = inlined_call_operand.vmem [shape: f32[128,128], index: 3, kind: input, shape index: {}]   ;;  %s1312_s0 = inlined_call_operand.vmem [shape: f32[8,128], index: 0, kind: input, shape index: {}]   ;;  %s1313_s5 = inlined_call_operand.vmem [shape: f32[128,256], index: 5, kind: input, shape index: {}]   ;;  %s1314_s2 = inlined_call_operand.vmem [shape: f32[1,128], index: 2, kind: input, shape index: {}]   ;;  %s1315_s7 = inlined_call_operand.vmem [shape: f32[128,128], index: 7, kind: input, shape index: {}]   ;;  %s1316_s9 = inlined_call_operand.vmem [shape: f32[128,128], index: 9, kind: input, shape index: {}]   ;;  %s1317_s4 = inlined_call_operand.vmem [shape: f32[1,128], index: 4, kind: input, shape index: {}]   ;;  %s1318_s6 = inlined_call_operand.vmem [shape: f32[1,256], index: 6, kind: input, shape index: {}]   ;;  %s1319_s8 = inlined_call_operand.vmem [shape: f32[1,128], index: 8, kind: input, shape index: {}]   ;;  %s1320_s11 = inlined_call_operand.vmem [shape: f32[8,256], index: 11, kind: output, shape index: {0}]   ;;  %s1321_s10 = inlined_call_operand.vmem [shape: f32[1,128], index: 10, kind: input, shape index: {}]   ;;  %s1322_s12 = inlined_call_operand.vmem [shape: f32[8,128], index: 12, kind: output, shape index: {1}]  }
   0x1   :  { %755 = vmatprep.subr.bf16.mxu0 %v886_v0  ;;  %v41_v1 = vld [vmem:[%s1310_s1] sm:$0xff]  ;;  %v42_v2 = vld [vmem:[%s1310_s1 + $0x8] sm:$0xff]  ;;  %v43_v3 = vld [vmem:[%s1310_s1 + $0x10] sm:$0xff]  ;;  %647 = vmatprep.mubr.msk.f32.mxu0 %vm887_vm0, %v888_v4 }
   0x2   :  { %v756_v5 = vpack.c.bf16 %v42_v2, %v41_v1  ;;  %v44_v6 = vld [vmem:[%s1310_s1 + $0x18] sm:$0xff]  ;;  %779 = vmatprep.subr.bf16.mxu1 %v886_v0  ;;  %682 = vmatprep.mubr.msk.f32.mxu1 %vm887_vm0, %v888_v4  ;;  %v45_v8 = vld [vmem:[%s1310_s1 + $0x20] sm:$0xff]  ;;  %v46_v9 = vld [vmem:[%s1310_s1 + $0x28] sm:$0xff] }
   0x3   :  { %v759_v7 = vpack.c.bf16 %v44_v6, %v43_v3  ;;  %v136_v10 = vld [vmem:[%s1311_s3] sm:$0xff]  ;;  %v137_v11 = vld [vmem:[%s1311_s3 + $0x8] sm:$0xff]  ;;  %v138_v12 = vld [vmem:[%s1311_s3 + $0x10] sm:$0xff]  ;;  %v762_v14 = vpack.c.bf16 %v46_v9, %v45_v8 }
   0x4   :  { %757 = vmatpush3.bf16.msra.mxu0 %v756_v5  ;;  %v139_v13 = vld [vmem:[%s1311_s3 + $0x18] sm:$0xff]  ;;  %v780_v15 = vpack.c.bf16 %v137_v11, %v136_v10  ;;  %v47_v16 = vld [vmem:[%s1310_s1 + $0x30] sm:$0xff]  ;;  %v140_v19 = vld [vmem:[%s1311_s3 + $0x20] sm:$0xff] }
   0x5   :  { %758 = vmatprep.subr.bf16.mxu0 %v886_v0  ;;  %v48_v17 = vld [vmem:[%s1310_s1 + $0x38] sm:$0xff]  ;;  %v783_v18 = vpack.c.bf16 %v139_v13, %v138_v12  ;;  %v141_v20 = vld [vmem:[%s1311_s3 + $0x28] sm:$0xff]  ;;  %v49_v22 = vld [vmem:[%s1310_s1 + $0x40] sm:$0xff] }
   0x6   :  { %781 = vmatpush3.bf16.msra.mxu1 %v780_v15  ;;  %v765_v21 = vpack.c.bf16 %v48_v17, %v47_v16  ;;  %v50_v23 = vld [vmem:[%s1310_s1 + $0x48] sm:$0xff]  ;;  %v786_v24 = vpack.c.bf16 %v141_v20, %v140_v19  ;;  %v142_v25 = vld [vmem:[%s1311_s3 + $0x30] sm:$0xff]  ;;  %v143_v26 = vld [vmem:[%s1311_s3 + $0x38] sm:$0xff] }
   0x7   :  { %782 = vmatprep.subr.bf16.mxu1 %v886_v0  ;;  %v768_v27 = vpack.c.bf16 %v50_v23, %v49_v22  ;;  %v51_v28 = vld [vmem:[%s1310_s1 + $0x50] sm:$0xff]  ;;  %v52_v29 = vld [vmem:[%s1310_s1 + $0x58] sm:$0xff]  ;;  %v789_v30 = vpack.c.bf16 %v143_v26, %v142_v25  ;;  %v144_v31 = vld [vmem:[%s1311_s3 + $0x40] sm:$0xff] }
   0x8   :  { %760 = vmatpush3.bf16.msra.mxu0 %v759_v7  ;;  %v145_v32 = vld [vmem:[%s1311_s3 + $0x48] sm:$0xff]  ;;  %v771_v33 = vpack.c.bf16 %v52_v29, %v51_v28  ;;  %v53_v34 = vld [vmem:[%s1310_s1 + $0x60] sm:$0xff]  ;;  %v146_v37 = vld [vmem:[%s1311_s3 + $0x50] sm:$0xff] }
   0x9   :  { %761 = vmatprep.subr.bf16.mxu0 %v886_v0  ;;  %v54_v35 = vld [vmem:[%s1310_s1 + $0x68] sm:$0xff]  ;;  %v792_v36 = vpack.c.bf16 %v145_v32, %v144_v31  ;;  %v147_v38 = vld [vmem:[%s1311_s3 + $0x58] sm:$0xff]  ;;  %v55_v40 = vld [vmem:[%s1310_s1 + $0x70] sm:$0xff] }
   0xa   :  { %784 = vmatpush3.bf16.msra.mxu1 %v783_v18  ;;  %v774_v39 = vpack.c.bf16 %v54_v35, %v53_v34  ;;  %v56_v41 = vld [vmem:[%s1310_s1 + $0x78] sm:$0xff]  ;;  %v795_v42 = vpack.c.bf16 %v147_v38, %v146_v37  ;;  %v40_v44 = vld [vmem:[%s1312_s0] sm:$0xff]  ;;  %v149_v46 = vld [vmem:[%s1311_s3 + $0x68] sm:$0xff] }
   0xb   :  { %785 = vmatprep.subr.bf16.mxu1 %v886_v0  ;;  %v777_v43 = vpack.c.bf16 %v56_v41, %v55_v40  ;;  %v148_v45 = vld [vmem:[%s1311_s3 + $0x60] sm:$0xff]  ;;  %v150_v48 = vld [vmem:[%s1311_s3 + $0x70] sm:$0xff]  ;;  %v151_v49 = vld [vmem:[%s1311_s3 + $0x78] sm:$0xff] }
   0xc   :  { %763 = vmatpush3.bf16.msra.mxu0 %v762_v14  ;;  %v798_v47 = vpack.c.bf16 %v149_v46, %v148_v45  ;;  %v801_v50 = vpack.c.bf16 %v151_v49, %v150_v48  ;;  %v230_v51 = vld [vmem:[%s1313_s5 + $0x8] sm:$0xff]  ;;  %v232_v52 = vld [vmem:[%s1313_s5 + $0x18] sm:$0xff]  ;;  %v229_v53 = vld [vmem:[%s1313_s5] sm:$0xff] }
   0xd   :  { %764 = vmatprep.subr.bf16.mxu0 %v886_v0  ;;  %v803_v54 = vpack.c.bf16 %v232_v52, %v230_v51  ;;  %v231_v55 = vld [vmem:[%s1313_s5 + $0x10] sm:$0xff]  ;;  %v234_v57 = vld [vmem:[%s1313_s5 + $0x28] sm:$0xff]  ;;  %v236_v58 = vld [vmem:[%s1313_s5 + $0x38] sm:$0xff] }
   0xe   :  { %787 = vmatpush3.bf16.msra.mxu1 %v786_v24  ;;  %v805_v56 = vpack.c.bf16 %v231_v55, %v229_v53  ;;  %v233_v59 = vld [vmem:[%s1313_s5 + $0x20] sm:$0xff]  ;;  %v807_v60 = vpack.c.bf16 %v236_v58, %v234_v57  ;;  %v235_v61 = vld [vmem:[%s1313_s5 + $0x30] sm:$0xff]  ;;  %v238_v63 = vld [vmem:[%s1313_s5 + $0x48] sm:$0xff] }
   0xf   :  { %788 = vmatprep.subr.bf16.mxu1 %v886_v0  ;;  %v809_v62 = vpack.c.bf16 %v235_v61, %v233_v59  ;;  %v240_v1 = vld [vmem:[%s1313_s5 + $0x58] sm:$0xff]  ;;  %v237_v3 = vld [vmem:[%s1313_s5 + $0x40] sm:$0xff]  ;;  %v239_v5 = vld [vmem:[%s1313_s5 + $0x50] sm:$0xff] }
  0x10   :  { %766 = vmatpush3.bf16.msra.mxu0 %v765_v21  ;;  %v811_v2 = vpack.c.bf16 %v240_v1, %v238_v63  ;;  %v813_v6 = vpack.c.bf16 %v239_v5, %v237_v3  ;;  %v242_v7 = vld [vmem:[%s1313_s5 + $0x68] sm:$0xff]  ;;  %v244_v8 = vld [vmem:[%s1313_s5 + $0x78] sm:$0xff]  ;;  %v241_v10 = vld [vmem:[%s1313_s5 + $0x60] sm:$0xff] }
  0x11   :  { %767 = vmatprep.subr.bf16.mxu0 %v886_v0  ;;  %v815_v9 = vpack.c.bf16 %v244_v8, %v242_v7  ;;  %v243_v11 = vld [vmem:[%s1313_s5 + $0x70] sm:$0xff]  ;;  %v246_v13 = vld [vmem:[%s1313_s5 + $0x88] sm:$0xff]  ;;  %v248_v14 = vld [vmem:[%s1313_s5 + $0x98] sm:$0xff] }
  0x12   :  { %790 = vmatpush3.bf16.msra.mxu1 %v789_v30  ;;  %v817_v12 = vpack.c.bf16 %v243_v11, %v241_v10  ;;  %v819_v15 = vpack.c.bf16 %v248_v14, %v246_v13  ;;  %v245_v16 = vld [vmem:[%s1313_s5 + $0x80] sm:$0xff]  ;;  %v247_v17 = vld [vmem:[%s1313_s5 + $0x90] sm:$0xff]  ;;  %v250_v19 = vld [vmem:[%s1313_s5 + $0xa8] sm:$0xff] }
  0x13   :  { %791 = vmatprep.subr.bf16.mxu1 %v886_v0  ;;  %v821_v18 = vpack.c.bf16 %v247_v17, %v245_v16  ;;  %v252_v20 = vld [vmem:[%s1313_s5 + $0xb8] sm:$0xff]  ;;  %v249_v22 = vld [vmem:[%s1313_s5 + $0xa0] sm:$0xff]  ;;  %v251_v23 = vld [vmem:[%s1313_s5 + $0xb0] sm:$0xff] }
  0x14   :  { %769 = vmatpush3.bf16.msra.mxu0 %v768_v27  ;;  %v823_v21 = vpack.c.bf16 %v252_v20, %v250_v19  ;;  %v825_v24 = vpack.c.bf16 %v251_v23, %v249_v22  ;;  %v254_v25 = vld [vmem:[%s1313_s5 + $0xc8] sm:$0xff]  ;;  %v256_v26 = vld [vmem:[%s1313_s5 + $0xd8] sm:$0xff]  ;;  %v253_v28 = vld [vmem:[%s1313_s5 + $0xc0] sm:$0xff] }
  0x15   :  { %770 = vmatprep.subr.bf16.mxu0 %v886_v0  ;;  %v827_v27 = vpack.c.bf16 %v256_v26, %v254_v25  ;;  %v255_v29 = vld [vmem:[%s1313_s5 + $0xd0] sm:$0xff]  ;;  %v258_v31 = vld [vmem:[%s1313_s5 + $0xe8] sm:$0xff]  ;;  %v260_v32 = vld [vmem:[%s1313_s5 + $0xf8] sm:$0xff] }
  0x16   :  { %793 = vmatpush3.bf16.msra.mxu1 %v792_v36  ;;  %v829_v30 = vpack.c.bf16 %v255_v29, %v253_v28  ;;  %v543_v34 = vld [vmem:[%s1314_s2] ss:$0 sm:$0xff]  ;;  %v352_v49 = vld [vmem:[%s1315_s7 + $0x30] sm:$0xff]  ;;  %v355_v53 = vld [vmem:[%s1315_s7 + $0x48] sm:$0xff] }
  0x17   :  { %794 = vmatprep.subr.bf16.mxu1 %v886_v0  ;;  %v346_v38 = vld [vmem:[%s1315_s7] sm:$0xff]  ;;  %v356_v55 = vld [vmem:[%s1315_s7 + $0x50] sm:$0xff]  ;;  %v359_v59 = vld [vmem:[%s1315_s7 + $0x68] sm:$0xff] }
  0x18   :  { %772 = vmatpush3.bf16.msra.mxu0 %v771_v33  ;;  %v831_v33 = vpack.c.bf16 %v260_v32, %v258_v31  ;;  %v350_v46 = vld [vmem:[%s1315_s7 + $0x20] sm:$0xff]  ;;  %v360_v63 = vld [vmem:[%s1315_s7 + $0x70] sm:$0xff]  ;;  %v444_v13 = vld [vmem:[%s1316_s9 + $0x18] sm:$0xff]  ;;  %v263_v32 = vlaneseq }
  0x19   :  { %773 = vmatprep.subr.bf16.mxu0 %v886_v0  ;;  %v354_v52 = vld [vmem:[%s1315_s7 + $0x40] sm:$0xff]  ;;  %v446_v16 = vld [vmem:[%s1316_s9 + $0x28] sm:$0xff]  ;;  %v451_v23 = vld [vmem:[%s1316_s9 + $0x50] sm:$0xff] }
  0x1a   :  { %796 = vmatpush3.bf16.msra.mxu1 %v795_v42  ;;  %v358_v58 = vld [vmem:[%s1315_s7 + $0x60] sm:$0xff]  ;;  %v455_v29 = vld [vmem:[%s1316_s9 + $0x70] sm:$0xff] }
  0x1b   :  { %797 = vmatprep.subr.bf16.mxu1 %v886_v0  ;;  %v257_v61 = vld [vmem:[%s1313_s5 + $0xe0] sm:$0xff] }
  0x1c   :  { %775 = vmatpush3.bf16.msra.mxu0 %v774_v39  ;;  %v347_v39 = vld [vmem:[%s1315_s7 + $0x8] sm:$0xff]  ;;  %v441_v5 = vld [vmem:[%s1316_s9] sm:$0xff] }
  0x1d   :  { %776 = vmatprep.subr.bf16.mxu0 %v886_v0  ;;  %v836_v41 = vpack.c.bf16 %v347_v39, %v346_v38  ;;  %v544_v7 = vld [vmem:[%s1317_s4] ss:$0 sm:$0xff] }
  0x1e   :  { %799 = vmatpush3.bf16.msra.mxu1 %v798_v47  ;;  %v351_v47 = vld [vmem:[%s1315_s7 + $0x28] sm:$0xff]  ;;  %v449_v20 = vld [vmem:[%s1316_s9 + $0x40] sm:$0xff] }
  0x1f   :  { %800 = vmatprep.subr.bf16.mxu1 %v886_v0  ;;  %v842_v48 = vpack.c.bf16 %v351_v47, %v350_v46  ;;  %v453_v26 = vld [vmem:[%s1316_s9 + $0x60] sm:$0xff] }
  0x20   :  { %778 = vmatpush3.bf16.msra.mxu0 %v777_v43  ;;  %v348_v43 = vld [vmem:[%s1315_s7 + $0x10] sm:$0xff] }
  0x21   :  { %804 = vmatprep.subr.bf16.mxu0 %v803_v54  ;;  %v848_v54 = vpack.c.bf16 %v355_v53, %v354_v52 }
  0x22   :  { %802 = vmatpush3.bf16.msra.mxu1 %v801_v50  ;;  %v353_v50 = vld [vmem:[%s1315_s7 + $0x38] sm:$0xff] }
  0x23   :  { %648 = vmatmul.mubr.f32.vlgmr.msra.gmra.mrb[0].mxu0 %v40_v44  ;;  %835 = vmatprep.subr.bf16.mxu1 %v886_v0  ;;  %v349_v44 = vld [vmem:[%s1315_s7 + $0x18] sm:$0xff]  ;;  %v845_v51 = vpack.c.bf16 %v353_v50, %v352_v49 }
  0x24   :  { %337 = vmatprep.mubr.f32.mxu0 %v888_v4  ;;  %806 = vmatpush1.bf16.msra.mxu0 %v805_v56  ;;  %v839_v45 = vpack.c.bf16 %v349_v44, %v348_v43  ;;  %v357_v56 = vld [vmem:[%s1315_s7 + $0x58] sm:$0xff] }
  0x25   :  { %808 = vmatprep.subr.bf16.mxu0 %v807_v60  ;;  %v851_v57 = vpack.c.bf16 %v357_v56, %v356_v55  ;;  %v854_v60 = vpack.c.bf16 %v359_v59, %v358_v58 }
  0x28   :  { %810 = vmatpush1.bf16.msra.mxu0 %v809_v62  ;;  %v259_v62 = vld [vmem:[%s1313_s5 + $0xf0] sm:$0xff] }
  0x29   :  { %812 = vmatprep.subr.bf16.mxu0 %v811_v2  ;;  %v833_v1 = vpack.c.bf16 %v259_v62, %v257_v61  ;;  %v361_v2 = vld [vmem:[%s1315_s7 + $0x78] sm:$0xff] }
  0x2a   :  { %v857_v3 = vpack.c.bf16 %v361_v2, %v360_v63 }
  0x2c   :  { %814 = vmatpush1.bf16.msra.mxu0 %v813_v6  ;;  %v442_v6 = vld [vmem:[%s1316_s9 + $0x8] sm:$0xff] }
  0x2d   :  { %816 = vmatprep.subr.bf16.mxu0 %v815_v9  ;;  %v860_v9 = vpack.c.bf16 %v442_v6, %v441_v5 }
  0x30   :  { %818 = vmatpush1.bf16.msra.mxu0 %v817_v12  ;;  %v443_v12 = vld [vmem:[%s1316_s9 + $0x10] sm:$0xff] }
  0x31   :  { %820 = vmatprep.subr.bf16.mxu0 %v819_v15  ;;  %v863_v14 = vpack.c.bf16 %v444_v13, %v443_v12  ;;  %v445_v15 = vld [vmem:[%s1316_s9 + $0x20] sm:$0xff] }
  0x32   :  { %v866_v17 = vpack.c.bf16 %v446_v16, %v445_v15 }
  0x34   :  { %822 = vmatpush1.bf16.msra.mxu0 %v821_v18  ;;  %v447_v18 = vld [vmem:[%s1316_s9 + $0x30] sm:$0xff] }
  0x35   :  { %824 = vmatprep.subr.bf16.mxu0 %v823_v21  ;;  %v450_v21 = vld [vmem:[%s1316_s9 + $0x48] sm:$0xff] }
  0x36   :  { %v872_v22 = vpack.c.bf16 %v450_v21, %v449_v20 }
  0x38   :  { %826 = vmatpush1.bf16.msra.mxu0 %v825_v24  ;;  %v452_v24 = vld [vmem:[%s1316_s9 + $0x58] sm:$0xff] }
  0x39   :  { %828 = vmatprep.subr.bf16.mxu0 %v827_v27  ;;  %v875_v25 = vpack.c.bf16 %v452_v24, %v451_v23  ;;  %v454_v27 = vld [vmem:[%s1316_s9 + $0x68] sm:$0xff] }
  0x3a   :  { %v878_v28 = vpack.c.bf16 %v454_v27, %v453_v26 }
  0x3c   :  { %830 = vmatpush1.bf16.msra.mxu0 %v829_v30  ;;  %v456_v30 = vld [vmem:[%s1316_s9 + $0x78] sm:$0xff] }
  0x3d   :  { %832 = vmatprep.subr.bf16.mxu0 %v831_v33  ;;  %v881_v31 = vpack.c.bf16 %v456_v30, %v455_v29  ;;  %v264_v33 = vshrl.u32 %v263_v32, 7 }
  0x40   :  { %834 = vmatpush1.bf16.msra.mxu0 %v833_v1 }
  0x41   :  { %859 = vmatprep.subr.bf16.mxu0 %v886_v0 }
  0xf6   :  { %v130_v35 = vpop.f32.mrb[0].mxu0 }
  0xf7   :  { %v131_v36 = vadd.f32 %v543_v34, %v130_v35  ;;  %v649_v37 = vpop.f32.mrb[1].mxu0  ;;  %v265_v34 = vsub.s32 0, %v264_v33  ;;  %v261_v35 = vld [vmem:[%s1318_s6] sm:$0x3] }
  0xf9   :  { %v134_v40 = vmul.f32 0.01, %v131_v36  ;;  %v266_v37 = vrot.slane %v261_v35, %v265_v34 }
  0xfb   :  { %v135_v42 = vmax.f32 %v131_v36, %v134_v40  ;;  %v269_v36 = vsub.s32 1, %v264_v33 }
  0xfd   :  { %683 = vmatmul.mubr.f32.vlgmr.msra.gmra.mrb[0].mxu1 %v135_v42  ;;  %v270_v38 = vrot.slane %v261_v35, %v269_v36 }
  0xfe   :  { %837 = vmatpush3.bf16.msra.mxu1 %v836_v41  ;;  %717 = vmatprep.mubr.msk.f32.mxu1 %vm887_vm0, %v888_v4 }
  0xff   :  { %838 = vmatprep.subr.bf16.mxu1 %v886_v0 }
 0x102   :  { %840 = vmatpush3.bf16.msra.mxu1 %v839_v45 }
 0x103   :  { %841 = vmatprep.subr.bf16.mxu1 %v886_v0 }
 0x106   :  { %843 = vmatpush3.bf16.msra.mxu1 %v842_v48  ;;  %v546_v48 = vld [vmem:[%s1321_s10] ss:$0 sm:$0xff] }
 0x107   :  { %844 = vmatprep.subr.bf16.mxu1 %v886_v0 }
 0x10a   :  { %846 = vmatpush3.bf16.msra.mxu1 %v845_v51 }
 0x10b   :  { %847 = vmatprep.subr.bf16.mxu1 %v886_v0 }
 0x10e   :  { %849 = vmatpush3.bf16.msra.mxu1 %v848_v54 }
 0x10f   :  { %850 = vmatprep.subr.bf16.mxu1 %v886_v0 }
 0x112   :  { %852 = vmatpush3.bf16.msra.mxu1 %v851_v57 }
 0x113   :  { %853 = vmatprep.subr.bf16.mxu1 %v886_v0 }
 0x116   :  { %855 = vmatpush3.bf16.msra.mxu1 %v854_v60 }
 0x117   :  { %856 = vmatprep.subr.bf16.mxu1 %v886_v0 }
 0x11a   :  { %858 = vmatpush3.bf16.msra.mxu1 %v857_v3 }
 0x1d0   :  { %v225_v8 = vpop.f32.mrb[0].mxu1 }
 0x1d1   :  { %v226_v10 = vadd.f32 %v544_v7, %v225_v8  ;;  %v684_v11 = vpop.f32.mrb[1].mxu1 }
 0x1d3   :  { %338 = vmatmul.mubr.f32.vlgmr.msra.gmra.mrb[2].mxu0 %v226_v10  ;;  %718 = vmatmul.mubr.f32.vlgmr.msra.gmra.mrb[2].mxu1 %v226_v10 }
 0x1d4   :  { %861 = vmatpush3.bf16.msra.mxu0 %v860_v9  ;;  %752 = vmatprep.mubr.msk.f32.mxu0 %vm887_vm0, %v888_v4  ;;  %v448_v4 = vld [vmem:[%s1316_s9 + $0x38] sm:$0xff] }
 0x1d5   :  { %862 = vmatprep.subr.bf16.mxu0 %v886_v0  ;;  %v869_v19 = vpack.c.bf16 %v448_v4, %v447_v18 }
 0x1d8   :  { %864 = vmatpush3.bf16.msra.mxu0 %v863_v14 }
 0x1d9   :  { %865 = vmatprep.subr.bf16.mxu0 %v886_v0 }
 0x1dc   :  { %867 = vmatpush3.bf16.msra.mxu0 %v866_v17 }
 0x1dd   :  { %868 = vmatprep.subr.bf16.mxu0 %v886_v0 }
 0x1e0   :  { %870 = vmatpush3.bf16.msra.mxu0 %v869_v19 }
 0x1e1   :  { %871 = vmatprep.subr.bf16.mxu0 %v886_v0 }
 0x1e4   :  { %873 = vmatpush3.bf16.msra.mxu0 %v872_v22 }
 0x1e5   :  { %874 = vmatprep.subr.bf16.mxu0 %v886_v0 }
 0x1e8   :  { %876 = vmatpush3.bf16.msra.mxu0 %v875_v25 }
 0x1e9   :  { %877 = vmatprep.subr.bf16.mxu0 %v886_v0 }
 0x1ec   :  { %879 = vmatpush3.bf16.msra.mxu0 %v878_v28 }
 0x1ed   :  { %880 = vmatprep.subr.bf16.mxu0 %v886_v0  ;;  %v545_v0 = vld [vmem:[%s1319_s8] ss:$0 sm:$0xff] }
 0x1f0   :  { %882 = vmatpush3.bf16.msra.mxu0 %v881_v31 }
 0x2a6   :  { %v339_v39 = vpop.f32.mrb[2].mxu0  ;;  %v435_v40 = vpop.f32.mrb[2].mxu1 }
 0x2a7   :  { %v340_v41 = vadd.f32 %v339_v39, %v266_v37  ;;  %v436_v42 = vadd.f32 %v545_v0, %v435_v40  ;;  %v341_v43 = vpop.f32.mrb[3].mxu0  ;;  %v719_v44 = vpop.f32.mrb[3].mxu1 }
 0x2a8   :  { %v342_v45 = vadd.f32 %v341_v43, %v270_v38 }
 0x2a9   :  { %344 = vst [vmem:[%s1320_s11] sm:$0xff] %v340_v41  ;;  %v439_v46 = vmul.f32 0.01, %v436_v42 }
 0x2aa   :  { %345 = vst [vmem:[%s1320_s11 + $0x8] sm:$0xff] %v342_v45 }
 0x2ab   :  { %v440_v47 = vmax.f32 %v436_v42, %v439_v46 }
 0x2ad   :  { %753 = vmatmul.mubr.f32.vlgmr.msra.gmra.mrb[4].mxu0 %v440_v47 }
 0x380   :  { %v530_v49 = vpop.f32.mrb[4].mxu0 }
 0x381   :  { %v531_v50 = vadd.f32 %v546_v48, %v530_v49  ;;  %v754_v51 = vpop.f32.mrb[5].mxu0 }
 0x383   :  { %534 = vst [vmem:[%s1322_s12] sm:$0xff] %v531_v50 }

</bundles_post_ra>
